<compile_context>
chip_gen: v5e
topology: v5e:2x2
jax: 0.10.0
libtpu: 0.0.40
codegen_flags: <defaults>
</compile_context>

<pallas_src>
import jax
import jax.numpy as jnp
from jax.experimental import pallas as pl
from jax.experimental.pallas import tpu as pltpu


def rnn_fused_kernel(x_ref, h_ref, wx_ref, wh_ref, b_ref, out_ref):
    """out = sigmoid(x @ Wx' + h @ Wh' + b')  — single fused pass per block."""
    hi = jax.lax.Precision.HIGHEST
    logits = jnp.dot(x_ref[...], wx_ref[...],
                     preferred_element_type=jnp.float32, precision=hi)
    logits = logits + jnp.dot(h_ref[...], wh_ref[...],
                              preferred_element_type=jnp.float32, precision=hi)
    logits = logits + b_ref[...]                           # (bb, O)
    # Exact sigmoid: EUP exp + exact reciprocal (approx=False keeps 1e-5 parity).
    out_ref[...] = pl.reciprocal(1.0 + jnp.exp(-logits))


def rnn_model_forward(x, hidden_state, w1_t, b1, w2_t, b2, *, block_b=8192):
    """x: (B, S, I), hidden_state: (B, S, H). Weights pre-transposed (in, out).

    Returns sigmoid(i2o(i2h(cat(x[:, -1], h[:, -1])))): (B, O) in float32.
    """
    B, _, I = x.shape
    H = hidden_state.shape[-1]
    O = w2_t.shape[1]

    # Last-timestep slices (layout-only XLA slices). Kept wrapper-side: a
    # (bb, 1, I) block on (B, S, I) would place a size-1 block on the sublane
    # dim with S > 1, which violates the (8,128) BlockSpec constraint.
    x_last = x[:, -1, :]                      # (B, I)
    h_last = hidden_state[:, -1, :]           # (B, H)

    # Trace-time algebraic fusion of i2h and i2o (tiny one-off matmuls):
    #   sigmoid(((x|h) @ W1 + b1) @ W2 + b2)
    #     = sigmoid(x @ (W1x @ W2) + h @ (W1h @ W2) + (b1 @ W2 + b2))
    hi = jax.lax.Precision.HIGHEST
    wx = jnp.dot(w1_t[:I, :], w2_t, precision=hi)          # (I, O)
    wh = jnp.dot(w1_t[I:, :], w2_t, precision=hi)          # (H, O)
    bf = jnp.dot(b1, w2_t, precision=hi) + b2              # (1, O)

    # Batch tiling: sublane-aligned blocks, >= 2 grid steps when the batch is
    # large enough so ("parallel",) can shard across v7x's two TensorCores.
    bb = min(block_b, B)
    if bb < B:
        bb = max(8, (bb // 8) * 8)                          # 8-row alignment
    if B >= 16 and pl.cdiv(B, bb) < 2:
        bb = max(8, ((-(-B // 2) + 7) // 8) * 8)            # round_up(cdiv(B,2), 8)
    grid = (pl.cdiv(B, bb),)

    # Only override scoped VMEM if our footprint would exceed v5e's 16 MiB default.
    itemsize = 4
    io_bytes = bb * (I + H + O) * itemsize                  # x, h, out blocks
    w_bytes = (I * O + H * O + O) * itemsize                # invariant operands
    need = 2 * (io_bytes + w_bytes) + (4 << 20)             # double-buffered + headroom
    vmem_limit = int(need) if need > (16 << 20) else None

    out = pl.pallas_call(
        rnn_fused_kernel,
        out_shape=jax.ShapeDtypeStruct((B, O), jnp.float32),
        grid_spec=pltpu.PrefetchScalarGridSpec(
            num_scalar_prefetch=0,
            grid=grid,
            in_specs=[
                pl.BlockSpec((bb, I), lambda i: (i, 0)),    # x_last rows
                pl.BlockSpec((bb, H), lambda i: (i, 0)),    # h_last rows
                pl.BlockSpec((I, O), lambda i: (0, 0)),     # Wx' (replicated)
                pl.BlockSpec((H, O), lambda i: (0, 0)),     # Wh' (replicated)
                pl.BlockSpec((1, O), lambda i: (0, 0)),     # b'  (replicated)
            ],
            out_specs=pl.BlockSpec((bb, O), lambda i: (i, 0)),
        ),
        compiler_params=pltpu.CompilerParams(
            dimension_semantics=("parallel",),              # megacore on v7x
            vmem_limit_bytes=vmem_limit,
        ),
    )(x_last, h_last, wx, wh, bf)
    return out


def reference_forward(x, hidden_state, w1_t, b1, w2_t, b2):
    """Unfused two-stage reference matching the PyTorch module (f32 precision)."""
    hi = jax.lax.Precision.HIGHEST
    combined = jnp.concatenate([x[:, -1, :], hidden_state[:, -1, :]], axis=1)
    h = jnp.dot(combined, w1_t, precision=hi) + b1
    o = jnp.dot(h, w2_t, precision=hi) + b2
    return jax.nn.sigmoid(o)


if __name__ == "__main__":
    # Small shapes consistent with the module.
    B, S = 2, 8
    input_size, hidden_size, output_size = 16, 32, 8

    key = jax.random.PRNGKey(0)
    k_x, k_h, k_w1, k_b1, k_w2, k_b2 = jax.random.split(key, 6)

    x = jax.random.normal(k_x, (B, S, input_size), dtype=jnp.float32)
    hidden_state = jax.random.normal(k_h, (B, S, hidden_size), dtype=jnp.float32)

    # nn.Linear-style uniform init, stored transposed as (in, out).
    fan_in1 = input_size + hidden_size
    bound1 = 1.0 / (fan_in1 ** 0.5)
    w1_t = jax.random.uniform(k_w1, (fan_in1, hidden_size),
                              minval=-bound1, maxval=bound1, dtype=jnp.float32)
    b1 = jax.random.uniform(k_b1, (1, hidden_size),
                            minval=-bound1, maxval=bound1, dtype=jnp.float32)

    fan_in2 = hidden_size
    bound2 = 1.0 / (fan_in2 ** 0.5)
    w2_t = jax.random.uniform(k_w2, (fan_in2, output_size),
                              minval=-bound2, maxval=bound2, dtype=jnp.float32)
    b2 = jax.random.uniform(k_b2, (1, output_size),
                            minval=-bound2, maxval=bound2, dtype=jnp.float32)

    out = rnn_model_forward(x, hidden_state, w1_t, b1, w2_t, b2)
    out = jax.block_until_ready(out)

    ref = reference_forward(x, hidden_state, w1_t, b1, w2_t, b2)
    assert out.shape == (B, output_size)
    assert jnp.allclose(out, ref, atol=1e-5, rtol=1e-5), "mismatch vs JAX reference"

    print("KERNEL_OK")
</pallas_src>

<mosaic_0001>
module attributes {stable_mosaic.version = 11 : i64} {
  func.func @rnn_fused_kernel(%arg0: i32, %arg1: memref<2x16xf32, #tpu.memory_space<vmem>>, %arg2: memref<2x32xf32, #tpu.memory_space<vmem>>, %arg3: memref<16x8xf32, #tpu.memory_space<vmem>>, %arg4: memref<32x8xf32, #tpu.memory_space<vmem>>, %arg5: memref<1x8xf32, #tpu.memory_space<vmem>>, %arg6: memref<2x8xf32, #tpu.memory_space<vmem>>) attributes {dimension_semantics = [#tpu.dimension_semantics<parallel>], iteration_bounds = array<i64: 1>, scalar_prefetch = 0 : i64, scratch_operands = 0 : i64, tpu.core_type = #tpu.core_type<tc>, window_params = [{transform_indices = @transform_0, window_bounds = array<i64: 2, 16>}, {transform_indices = @transform_1, window_bounds = array<i64: 2, 32>}, {pipeline_mode = #tpu.pipeline_mode<synchronous>, transform_indices = @transform_2, window_bounds = array<i64: 16, 8>}, {pipeline_mode = #tpu.pipeline_mode<synchronous>, transform_indices = @transform_3, window_bounds = array<i64: 32, 8>}, {pipeline_mode = #tpu.pipeline_mode<synchronous>, transform_indices = @transform_4, window_bounds = array<i64: 1, 8>}, {transform_indices = @transform_5, window_bounds = array<i64: 2, 8>}]} {
    %c0 = arith.constant 0 : index
    %c0_0 = arith.constant 0 : index
    %0 = vector.load %arg1[%c0, %c0_0] : memref<2x16xf32, #tpu.memory_space<vmem>>, vector<2x16xf32>
    %c0_1 = arith.constant 0 : index
    %c0_2 = arith.constant 0 : index
    %1 = vector.load %arg3[%c0_1, %c0_2] : memref<16x8xf32, #tpu.memory_space<vmem>>, vector<16x8xf32>
    %cst = arith.constant dense<0.000000e+00> : vector<2x8xf32>
    %2 = tpu.matmul %0, %1, %cst {dimension_numbers = #tpu.dot_dimension_numbers<[1], [0], [0], [1], [0, 0, 1, 1], [], []>, precision = #tpu.contract_precision<fp32>} : vector<2x16xf32>, vector<16x8xf32>, vector<2x8xf32> -> vector<2x8xf32>
    %c0_3 = arith.constant 0 : index
    %c0_4 = arith.constant 0 : index
    %3 = vector.load %arg2[%c0_3, %c0_4] : memref<2x32xf32, #tpu.memory_space<vmem>>, vector<2x32xf32>
    %c0_5 = arith.constant 0 : index
    %c0_6 = arith.constant 0 : index
    %4 = vector.load %arg4[%c0_5, %c0_6] : memref<32x8xf32, #tpu.memory_space<vmem>>, vector<32x8xf32>
    %cst_7 = arith.constant dense<0.000000e+00> : vector<2x8xf32>
    %5 = tpu.matmul %3, %4, %cst_7 {dimension_numbers = #tpu.dot_dimension_numbers<[1], [0], [0], [1], [0, 0, 1, 1], [], []>, precision = #tpu.contract_precision<fp32>} : vector<2x32xf32>, vector<32x8xf32>, vector<2x8xf32> -> vector<2x8xf32>
    %6 = arith.addf %2, %5 : vector<2x8xf32>
    %c0_8 = arith.constant 0 : index
    %c0_9 = arith.constant 0 : index
    %7 = vector.load %arg5[%c0_8, %c0_9] : memref<1x8xf32, #tpu.memory_space<vmem>>, vector<1x8xf32>
    %8 = vector.broadcast %7 : vector<1x8xf32> to vector<2x8xf32>
    %9 = arith.addf %6, %8 : vector<2x8xf32>
    %cst_10 = arith.constant 0.000000e+00 : f32
    %10 = vector.broadcast %cst_10 : f32 to vector<2x8xf32>
    %11 = arith.subf %10, %9 : vector<2x8xf32>
    %12 = math.exp %11 : vector<2x8xf32>
    %cst_11 = arith.constant 1.000000e+00 : f32
    %13 = vector.broadcast %cst_11 : f32 to vector<2x8xf32>
    %14 = arith.addf %13, %12 : vector<2x8xf32>
    %15 = tpu.reciprocal %14 : vector<2x8xf32> -> vector<2x8xf32>
    %c0_12 = arith.constant 0 : index
    %c0_13 = arith.constant 0 : index
    %16 = vector.load %arg6[%c0_12, %c0_13] : memref<2x8xf32, #tpu.memory_space<vmem>>, vector<2x8xf32>
    tpu.vector_store %arg6[%c0_12, %c0_13], %15 {strides = array<i32>} : memref<2x8xf32, #tpu.memory_space<vmem>>, vector<2x8xf32>,
    return
  }
  func.func @transform_0(%arg0: i32) -> (i32, i32) {
    %c0_i32 = arith.constant 0 : i32
    %c0_i32_0 = arith.constant 0 : i32
    return %arg0, %c0_i32 : i32, i32
  }
  func.func @transform_1(%arg0: i32) -> (i32, i32) {
    %c0_i32 = arith.constant 0 : i32
    %c0_i32_0 = arith.constant 0 : i32
    return %arg0, %c0_i32 : i32, i32
  }
  func.func @transform_2(%arg0: i32) -> (i32, i32) {
    %c0_i32 = arith.constant 0 : i32
    %c0_i32_0 = arith.constant 0 : i32
    %c0_i32_1 = arith.constant 0 : i32
    return %c0_i32, %c0_i32_0 : i32, i32
  }
  func.func @transform_3(%arg0: i32) -> (i32, i32) {
    %c0_i32 = arith.constant 0 : i32
    %c0_i32_0 = arith.constant 0 : i32
    %c0_i32_1 = arith.constant 0 : i32
    return %c0_i32, %c0_i32_0 : i32, i32
  }
  func.func @transform_4(%arg0: i32) -> (i32, i32) {
    %c0_i32 = arith.constant 0 : i32
    %c0_i32_0 = arith.constant 0 : i32
    %c0_i32_1 = arith.constant 0 : i32
    return %c0_i32, %c0_i32_0 : i32, i32
  }
  func.func @transform_5(%arg0: i32) -> (i32, i32) {
    %c0_i32 = arith.constant 0 : i32
    %c0_i32_0 = arith.constant 0 : i32
    return %arg0, %c0_i32 : i32, i32
  }
}

</mosaic_0001>

<bundles_post_ra>
// kernel: tpu_custom_call.1
= control target key start
LH: loop header
LB: loop body
LE: loop exit
PB: predicated region body
PF: predicated region fallthrough
CT: control target
= control target key end

     0   :  { %vm29_vm0 = vcmask 261120   ;;  %vm218_vm1 = vcmask 130048   ;;  %s558_s0 = inlined_call_operand.vmem [shape: f32[2,16], index: 0, kind: input, shape index: {}]   ;;  %s559_s1 = inlined_call_operand.vmem [shape: f32[2,32], index: 1, kind: input, shape index: {}]   ;;  %s560_s2 = inlined_call_operand.vmem [shape: f32[16,8], index: 2, kind: input, shape index: {}]   ;;  %s561_s3 = inlined_call_operand.vmem [shape: f32[32,8], index: 3, kind: input, shape index: {}]   ;;  %s562_s4 = inlined_call_operand.vmem [shape: f32[1,8], index: 4, kind: input, shape index: {}]   ;;  %s563_s5 = inlined_call_operand.hbm [shape: f32[2,8], index: 5, kind: output, shape index: {}]  }
   0x1   :  { %v28_v0 = vld [vmem:[%s561_s3 + $0x18] sm:$0xff]  ;;  %v27_v1 = vld [vmem:[%s561_s3 + $0x10] sm:$0xff]  ;;  %v26_v2 = vld [vmem:[%s561_s3 + $0x8] sm:$0xff] }
   0x2   :  { %v494_v3 = vand.u32 4294901760, %v28_v0  ;;  %v496_v4 = vand.u32 4294901760, %v27_v1  ;;  %v498_v5 = vand.u32 4294901760, %v26_v2  ;;  %v25_v6 = vld [vmem:[%s561_s3] sm:$0xff]  ;;  %v23_v10 = vld [vmem:[%s560_s2 + $0x8] sm:$0xff] }
   0x3   :  { %v24_v7 = vld [vmem:[%s559_s1] sm:$0x3]  ;;  %v506_v8 = vand.u32 4294901760, %v25_v6 }
   0x4   :  { %v31_v9 = vsel %vm29_vm0, %v24_v7, 0  ;;  %v22_v11 = vld [vmem:[%s560_s2] sm:$0xff]  ;;  %v75_v13 = vsub.f32 %v28_v0, %v494_v3  ;;  %46 = vmatpush.msra.mxu0 %v494_v3  ;;  %v81_v14 = vsub.f32 %v27_v1, %v496_v4  ;;  %146 = vmatpush.msra.mxu3 %v494_v3  ;;  %v87_v15 = vsub.f32 %v26_v2, %v498_v5 }
   0x5   :  { %v21_v12 = vld [vmem:[%s558_s0] sm:$0x3]  ;;  %v522_v16 = vand.u32 4294901760, %v31_v9 }
   0x6   :  { %10 = vsyncpa [#allocation3], 0  ;;  %v93_v17 = vsub.f32 %v25_v6, %v506_v8  ;;  %v525_v18 = vand.u32 4294901760, %v23_v10  ;;  %v527_v19 = vand.u32 4294901760, %v22_v11  ;;  %v220_v20 = vsel %vm218_vm1, %v21_v12, 0  ;;  %117 = vmatpush.msra.mxu2 %v75_v13  ;;  %48 = vmatpush.msra.mxu0 %v496_v4  ;;  %s454_s2 = smov [#allocation2]  }
   0x7   :  { %v76_v21 = vand.u32 4294901760, %v75_v13  ;;  %v82_v22 = vand.u32 4294901760, %v81_v14  ;;  %v54_v23 = vsub.f32 %v31_v9, %v522_v16  ;;  %v88_v24 = vand.u32 4294901760, %v87_v15  ;;  %148 = vmatpush.msra.mxu3 %v496_v4  ;;  %s411_s3 = sshll.u32 %s454_s2, 4  ;;  %s412_s3 = int_to_ptr.vmem [resolvable:$true] %s411_s3 }
   0x8   :  { %v264_v25 = vsub.f32 %v23_v10, %v525_v18  ;;  %v94_v26 = vand.u32 4294901760, %v93_v17  ;;  %v270_v27 = vsub.f32 %v22_v11, %v527_v19  ;;  %v240_v28 = vand.u32 4294901760, %v220_v20  ;;  %120 = vmatpush.msra.mxu2 %v81_v14  ;;  %50 = vmatpush.msra.mxu0 %v498_v5 }
   0x9   :  { %v77_v29 = vsub.f32 %v75_v13, %v76_v21  ;;  %v83_v30 = vsub.f32 %v81_v14, %v82_v22  ;;  %v89_v31 = vsub.f32 %v87_v15, %v88_v24  ;;  %v55_v32 = vand.u32 4294901760, %v54_v23  ;;  %150 = vmatpush.msra.mxu3 %v498_v5 }
   0xa   :  { %v265_v33 = vand.u32 4294901760, %v264_v25  ;;  %v271_v34 = vand.u32 4294901760, %v270_v27  ;;  %v241_v35 = vsub.f32 %v220_v20, %v240_v28  ;;  %123 = vmatpush.msra.mxu2 %v87_v15  ;;  %52 = vmatpush.msra.mxu0 %v506_v8  ;;  %v95_v39 = vsub.f32 %v93_v17, %v94_v26 }
   0xb   :  { %v78_v36 = vand.u32 4294901760, %v77_v29  ;;  %v84_v37 = vand.u32 4294901760, %v83_v30  ;;  %v56_v38 = vsub.f32 %v54_v23, %v55_v32  ;;  %152 = vmatpush.msra.mxu3 %v506_v8  ;;  %v90_v43 = vand.u32 4294901760, %v89_v31 }
   0xc   :  { %175 = vmatpush.msrb.mxu0 %v76_v21  ;;  %v266_v40 = vsub.f32 %v264_v25, %v265_v33  ;;  %v272_v41 = vsub.f32 %v270_v27, %v271_v34  ;;  %v242_v42 = vand.u32 4294901760, %v241_v35  ;;  %126 = vmatpush.msra.mxu2 %v93_v17  ;;  %v96_v48 = vand.u32 4294901760, %v95_v39 }
   0xd   :  { %79 = vmatpush.msra.mxu1 %v78_v36  ;;  %v57_v44 = vand.u32 4294901760, %v56_v38  ;;  %129 = vmatmul.f32.vlgmr.msra.gmra.mxu2 %v54_v23  ;;  %vm404_vm5 = vcmask 58368  }
   0xe   :  { %156 = vmatmul.f32.vlgmr.msra.gmra.mxu3 %v55_v32  ;;  %v267_v45 = vand.u32 4294901760, %v266_v40  ;;  %v273_v46 = vand.u32 4294901760, %v272_v41  ;;  %v243_v47 = vsub.f32 %v241_v35, %v242_v42  ;;  %237 = vmatpush.msrb.mxu2 %v525_v18 }
   0xf   :  { %85 = vmatpush.msra.mxu1 %v84_v37  ;;  %58 = vmatmul.f32.vlgmr.msra.gmra.mxu0 %v57_v44 }
  0x10   :  { %268 = vmatpush.msrb.mxu3 %v267_v45  ;;  %179 = vmatpush.msrb.mxu0 %v82_v22  ;;  %v244_v49 = vand.u32 4294901760, %v243_v47 }
  0x11   :  { %91 = vmatpush.msra.mxu1 %v90_v43  ;;  %239 = vmatpush.msrb.mxu2 %v527_v19 }
  0x12   :  { %274 = vmatpush.msrb.mxu3 %v273_v46  ;;  %183 = vmatpush.msrb.mxu0 %v88_v24 }
  0x13   :  { %97 = vmatpush.msra.mxu1 %v96_v48  ;;  %348 = vmatpush.msra.mxu2 %v265_v33 }
  0x14   :  { %99 = vmatmul.f32.vlgmr.msra.gmra.mxu1 %v522_v16  ;;  %187 = vmatpush.msrb.mxu0 %v94_v26 }
  0x15   :  { %206 = vmatpush.msrb.mxu1 %v494_v3  ;;  %245 = vmatmul.f32.vlgmr.msrb.gmra.mxu2 %v244_v49 }
  0x16   :  { %276 = vmatmul.f32.vlgmr.msrb.gmra.mxu3 %v240_v28  ;;  %296 = vmatpush.msra.mxu0 %v264_v25 }
  0x17   :  { %208 = vmatpush.msrb.mxu1 %v496_v4  ;;  %189 = vmatmul.f32.vlgmr.msrb.gmra.mxu0 %v522_v16 }
  0x18   :  { %373 = vmatpush.msra.mxu3 %v525_v18  ;;  %352 = vmatpush.msra.mxu2 %v271_v34 }
  0x19   :  { %210 = vmatpush.msrb.mxu1 %v498_v5  ;;  %299 = vmatpush.msra.mxu0 %v270_v27 }
  0x1a   :  { %375 = vmatpush.msra.mxu3 %v527_v19 }
  0x1b   :  { %212 = vmatpush.msrb.mxu1 %v506_v8  ;;  %v423_v8 = vld [vmem:[%s562_s4] ss:$0 sm:$0xff]  ;;  %s413_s4 = sshll.u32 %s563_s5, 4  ;;  %s414_s4 = int_to_ptr.hbm [resolvable:$true] %s413_s4 }
  0x1c   :  { %214 = vmatmul.f32.vlgmr.msrb.gmra.mxu1 %v522_v16 }
  0x1d   :  { %321 = vmatpush.msra.mxu1 %v525_v18  ;;  %354 = vmatmul.f32.vlgmr.msra.gmra.mxu2 %v240_v28 }
  0x1e   :  { %377 = vmatmul.f32.vlgmr.msra.gmra.mxu3 %v240_v28 }
  0x1f   :  { %323 = vmatpush.msra.mxu1 %v527_v19  ;;  %302 = vmatmul.f32.vlgmr.msra.gmra.mxu0 %v241_v35 }
  0x24   :  { %327 = vmatmul.f32.vlgmr.msra.gmra.mxu1 %v242_v42 }
  0x8c   :  { %v59_v50 = vpop.f32.mrf.mxu0 }
  0x90   :  { %v130_v52 = vpop.f32.mrf.mxu2 }
  0x91   :  { %v100_v51 = vpop.f32.mrf.mxu1  ;;  %v157_v54 = vpop.f32.mrf.mxu3 }
  0x92   :  { %v101_v53 = vadd.f32 %v100_v51, %v59_v50 }
  0x94   :  { %v131_v55 = vadd.f32 %v130_v52, %v101_v53  ;;  %v190_v56 = vpop.f32.mrf.mxu0 }
  0x96   :  { %v158_v57 = vadd.f32 %v157_v54, %v131_v55 }
  0x98   :  { %v191_v58 = vadd.f32 %v190_v56, %v158_v57  ;;  %v246_v60 = vpop.f32.mrf.mxu2 }
  0x99   :  { %v215_v59 = vpop.f32.mrf.mxu1  ;;  %v277_v62 = vpop.f32.mrf.mxu3 }
  0x9a   :  { %v216_v61 = vadd.f32 %v215_v59, %v191_v58 }
  0x9c   :  { %v247_v63 = vadd.f32 %v246_v60, %v216_v61  ;;  %v303_v0 = vpop.f32.mrf.mxu0 }
  0x9e   :  { %v278_v1 = vadd.f32 %v277_v62, %v247_v63 }
  0xa0   :  { %v304_v2 = vadd.f32 %v303_v0, %v278_v1  ;;  %v355_v4 = vpop.f32.mrf.mxu2 }
  0xa1   :  { %v328_v3 = vpop.f32.mrf.mxu1  ;;  %v378_v6 = vpop.f32.mrf.mxu3 }
  0xa2   :  { %v329_v5 = vadd.f32 %v328_v3, %v304_v2 }
  0xa4   :  { %v356_v7 = vadd.f32 %v355_v4, %v329_v5 }
  0xa6   :  { %v379_v9 = vadd.f32 %v378_v6, %v356_v7 }
  0xa8   :  { %v385_v10 = vadd.f32 %v423_v8, %v379_v9 }
  0xaa   :  { %v386_v11 = vsub.f32 0.0, %v385_v10 }
  0xac   :  { %v387_v12 = vmul.f32 1.442695, %v386_v11 }
  0xae   :  { %424 = vpow2.f32 %v387_v12 }
  0xb4   :  { %v425_v13 = vpop.eup %424 }
  0xb5   :  { %v389_v14 = vadd.f32 1.0, %v425_v13 }
  0xb7   :  { %426 = vrcp.f32 %v389_v14  ;;  %v401_v18 = vand.u32 2147483648, %v389_v14  ;;  %v399_v20 = vand.u32 2147483647, %v389_v14  ;;  %vm395_vm3 = vweird.f32 %v389_v14 }
  0xb9   :  { %v402_v22 = vor.u32 1.1754944e-38, %v401_v18  ;;  %vm400_vm6 = vcmp.eq.f32.partialorder %v399_v20, 8.507059e+37 }
  0xbd   :  { %v427_v15 = vpop.eup %426 }
  0xbe   :  { %v391_v16 = vmul.f32 %v427_v15, %v389_v14  ;;  %vm396_vm2 = vweird.f32 %v427_v15 }
  0xbf   :  { %vm397_vm4 = vmor %vm395_vm3, %vm396_vm2 }
  0xc0   :  { %v392_v17 = vsub.f32 1.0, %v391_v16 }
  0xc2   :  { %v393_v19 = vmul.f32 %v427_v15, %v392_v17 }
  0xc4   :  { %v394_v21 = vadd.f32 %v427_v15, %v393_v19 }
  0xc6   :  { %v398_v23 = vsel %vm397_vm4, %v427_v15, %v394_v21 }
  0xc7   :  { %v403_v24 = vsel %vm400_vm6, %v402_v22, %v398_v23 }
  0xc8   :  { %405 = vst.msk [vmem:[#allocation2] sm:$0x3] %vm404_vm5, %v403_v24 }
  0xc9   :  { %416 = dma.vmem_to_hbm [thread:$0]  %s412_s3, 32, %s414_s4, [#allocation3]  }
  0xca   :  { %452 = dma.done.wait [#allocation3], 32  }
  0xcb   :  { %453 = vsyncadd [#allocation3], 4294967264 }
  0xcc   :  { %421 = vsyncpa [#allocation3], 1 }

</bundles_post_ra>
